<compile_context>
chip_gen: v5e
topology: v5e:2x2
jax: 0.10.0
libtpu: 0.0.40
codegen_flags: <defaults>
</compile_context>

<pallas_src>
import jax
import jax.numpy as jnp
from jax import lax
from jax.experimental import pallas as pl
from jax.experimental.pallas import tpu as pltpu

EPS = 1e-5  # PyTorch InstanceNorm3d default eps


# --------------------------------------------------------------------------- #
# Helpers
# --------------------------------------------------------------------------- #
def _round_down(v, m):
    return (v // m) * m


def _vmem_capacity_bytes(default=64 * 1024 * 1024):
    """Physical VMEM of the current TPU generation (conservative default: v7x)."""
    try:
        info = pltpu.get_tpu_info()
        cap = int(getattr(info, "vmem_capacity_bytes", 0) or 0)
        return cap if cap > 0 else default
    except Exception:  # non-TPU tracing environment, older API, etc.
        return default


def _sublane_multiple(itemsize):
    # Native sublane packing: f32 -> 8, bf16 -> 16, int8/fp8 -> 32.
    return {4: 8, 2: 16, 1: 32}.get(int(itemsize), 8)


def _lane_slices(F, tile_nc):
    """Static, 128-aligned lane chunks bounding each in-kernel temporary to ~64K f32
    elements while keeping the (statically unrolled) slice count <= ~32."""
    target = max(512, 65536 // max(tile_nc, 1))
    target = max(128, _round_down(target, 128))
    min_chunk = -(-F // 32)                  # at most ~32 full chunks
    chunk = max(target, min_chunk)
    chunk = -(-chunk // 128) * 128           # lane-aligned
    chunk = min(chunk, F)
    slices, start = [], 0
    while start < F:
        size = min(chunk, F - start)
        slices.append((start, size))
        start += size
    return slices, chunk


# --------------------------------------------------------------------------- #
# Resident path: whole row (instance) lives in VMEM for one grid step
# --------------------------------------------------------------------------- #
def _make_resident_kernel(F, slices):
    inv_f = 1.0 / F

    def kernel(gamma_ref, beta_ref, x_ref, o_ref):
        # ---- Pass 1: per-row mean (chunked lane reductions, (rows, 1) carries) ----
        s = jnp.zeros(gamma_ref.shape, jnp.float32)
        for st, sz in slices:
            xc = x_ref[:, st:st + sz].astype(jnp.float32)
            s = s + jnp.sum(xc, axis=-1, keepdims=True)
        mean = s * inv_f

        # ---- Pass 2: centered sum of squares -> rsqrt (EUP) -> folded affine ----
        ss = jnp.zeros(gamma_ref.shape, jnp.float32)
        for st, sz in slices:
            xc = x_ref[:, st:st + sz].astype(jnp.float32)
            d = xc - mean
            ss = ss + jnp.sum(d * d, axis=-1, keepdims=True)
        inv = lax.rsqrt(ss * inv_f + EPS)
        scale = gamma_ref[...] * inv                  # (rows, 1)
        shift = beta_ref[...] - mean * scale          # (rows, 1)

        # ---- Pass 3: y = x*scale + shift, ReLU, lane-dense store per chunk ----
        for st, sz in slices:
            xc = x_ref[:, st:st + sz].astype(jnp.float32)
            y = jnp.maximum(xc * scale + shift, 0.0)
            o_ref[:, st:st + sz] = y.astype(o_ref.dtype)

    return kernel


def _resident_forward(xr, gamma_rows, beta_rows, tile_nc, vmem_cap):
    NC, F = xr.shape
    itemsize = jnp.dtype(xr.dtype).itemsize
    slices, chunk = _lane_slices(F, tile_nc)
    grid = (pl.cdiv(NC, tile_nc),)

    # 2x input + 2x output pipeline buffers plus a few live f32 chunk temporaries.
    footprint = 4 * tile_nc * F * itemsize + 4 * tile_nc * chunk * 4 + (2 << 20)
    vmem_limit = int(min(max(footprint, 32 << 20),
                         max(32 << 20, int(0.9 * vmem_cap))))

    cost = pl.CostEstimate(
        flops=7 * NC * F,
        transcendentals=NC,
        bytes_accessed=2 * NC * F * itemsize + 2 * NC * 4,
    )

    return pl.pallas_call(
        _make_resident_kernel(F, slices),
        out_shape=jax.ShapeDtypeStruct((NC, F), xr.dtype),
        grid=grid,
        in_specs=[
            pl.BlockSpec((tile_nc, 1), lambda i: (i, 0)),   # gamma rows
            pl.BlockSpec((tile_nc, 1), lambda i: (i, 0)),   # beta rows
            pl.BlockSpec((tile_nc, F), lambda i: (i, 0)),   # x rows
        ],
        out_specs=pl.BlockSpec((tile_nc, F), lambda i: (i, 0)),
        compiler_params=pltpu.CompilerParams(
            dimension_semantics=("parallel",),
            vmem_limit_bytes=vmem_limit,
        ),
        cost_estimate=cost,
    )(gamma_rows, beta_rows, xr)


# --------------------------------------------------------------------------- #
# Feature-tiled fallback: stats accumulated over an "arbitrary" F axis, then a
# second normalize sweep (used when rows do not fit VMEM or NC is too small to
# build a multi-step grid for a large volume).
# --------------------------------------------------------------------------- #
def _make_stats_kernel(F, tile_f, needs_mask):
    inv_f = 1.0 / F

    def kernel(gamma_ref, beta_ref, x_ref, scale_ref, shift_ref, s_ref, ss_ref):
        j = pl.program_id(1)

        @pl.when(j == 0)
        def _():
            s_ref[...] = jnp.zeros_like(s_ref)
            ss_ref[...] = jnp.zeros_like(ss_ref)

        x = x_ref[...].astype(jnp.float32)
        if needs_mask:  # last F block may carry padded garbage lanes
            lane = lax.broadcasted_iota(jnp.int32, x.shape, 1) + j * tile_f
            x = jnp.where(lane < F, x, 0.0)
        s_ref[...] += jnp.sum(x, axis=-1, keepdims=True)
        ss_ref[...] += jnp.sum(x * x, axis=-1, keepdims=True)

        @pl.when(j == pl.num_programs(1) - 1)
        def _():
            mean = s_ref[...] * inv_f
            # TODO(synk): E[x^2]-E[x]^2 can lose precision when |mean| >> std; the
            # resident path uses centered statistics, this fallback clamps instead.
            var = jnp.maximum(ss_ref[...] * inv_f - mean * mean, 0.0)
            inv = lax.rsqrt(var + EPS)
            sc = gamma_ref[...] * inv
            scale_ref[...] = sc
            shift_ref[...] = beta_ref[...] - mean * sc

    return kernel


def _norm_kernel(scale_ref, shift_ref, x_ref, o_ref):
    x = x_ref[...].astype(jnp.float32)
    y = jnp.maximum(x * scale_ref[...] + shift_ref[...], 0.0)
    o_ref[...] = y.astype(o_ref.dtype)


def _feature_tiled_forward(xr, gamma_rows, beta_rows, vmem_cap, tile_f=None):
    NC, F = xr.shape
    itemsize = jnp.dtype(xr.dtype).itemsize
    sub = _sublane_multiple(itemsize)
    tile_nc = NC if NC <= sub else sub
    budget = int(0.5 * vmem_cap)

    if tile_f is None:
        # 2 in + 2 out x-block buffers plus f32 temporaries, per lane column.
        per_lane = tile_nc * (4 * itemsize + 8)
        tile_f = budget // max(per_lane, 1)
        tile_f = max(128, min(_round_down(tile_f, 128), 16384))
    if tile_f >= F:
        tile_f = F
    n_nc = pl.cdiv(NC, tile_nc)
    n_f = pl.cdiv(F, tile_f)
    needs_mask = (F % tile_f) != 0

    blk = tile_nc * tile_f
    footprint = 4 * blk * itemsize + 2 * blk * 4 + (2 << 20)
    vmem_limit = int(min(max(footprint, 32 << 20),
                         max(32 << 20, int(0.9 * vmem_cap))))

    row_shape = jax.ShapeDtypeStruct((NC, 1), jnp.float32)
    row_spec = pl.BlockSpec((tile_nc, 1), lambda i, j: (i, 0))
    x_spec = pl.BlockSpec((tile_nc, tile_f), lambda i, j: (i, j))

    scale_rows, shift_rows = pl.pallas_call(
        _make_stats_kernel(F, tile_f, needs_mask),
        out_shape=(row_shape, row_shape),
        grid=(n_nc, n_f),
        in_specs=[row_spec, row_spec, x_spec],
        out_specs=[row_spec, row_spec],
        scratch_shapes=[pltpu.VMEM((tile_nc, 1), jnp.float32),
                        pltpu.VMEM((tile_nc, 1), jnp.float32)],
        compiler_params=pltpu.CompilerParams(
            dimension_semantics=("parallel", "arbitrary"),
            vmem_limit_bytes=vmem_limit,
        ),
        cost_estimate=pl.CostEstimate(
            flops=4 * NC * F, transcendentals=NC,
            bytes_accessed=NC * F * itemsize + 4 * NC * 4),
    )(gamma_rows, beta_rows, xr)

    out = pl.pallas_call(
        _norm_kernel,
        out_shape=jax.ShapeDtypeStruct((NC, F), xr.dtype),
        grid=(n_nc, n_f),
        in_specs=[row_spec, row_spec, x_spec],
        out_specs=x_spec,
        compiler_params=pltpu.CompilerParams(
            dimension_semantics=("parallel", "parallel"),
            vmem_limit_bytes=vmem_limit,
        ),
        cost_estimate=pl.CostEstimate(
            flops=3 * NC * F, transcendentals=0,
            bytes_accessed=2 * NC * F * itemsize + 2 * NC * 4),
    )(scale_rows, shift_rows, xr)
    return out


# --------------------------------------------------------------------------- #
# Public wrapper: BaseOp.forward (weight=identity -> InstanceNorm3d -> ReLU)
# --------------------------------------------------------------------------- #
def base_op_forward(x, gamma, beta, *, _force_feature_tiled=False, _force_tile_f=None):
    """BaseOp.forward for ops_order='weight_norm_act', dropout_rate=0.

    x     : (N, C, D, H, W)
    gamma : (C,) InstanceNorm3d weight
    beta  : (C,) InstanceNorm3d bias
    """
    N, C, D, H, W = x.shape
    NC, F = N * C, D * H * W
    xr = x.reshape(NC, F)
    itemsize = jnp.dtype(x.dtype).itemsize
    sub = _sublane_multiple(itemsize)

    # Per-row affine (instance (n, c) uses channel c); tiny (NC, 1) f32 arrays that
    # ride along as lane-broadcast blocks -- no SMEM scalar reads in the hot loop.
    gamma_rows = jnp.broadcast_to(
        gamma.astype(jnp.float32)[None, :], (N, C)).reshape(NC, 1)
    beta_rows = jnp.broadcast_to(
        beta.astype(jnp.float32)[None, :], (N, C)).reshape(NC, 1)

    vmem_cap = _vmem_capacity_bytes()
    budget = int(0.55 * vmem_cap)
    # Resident-path per-row footprint: 2 in + 2 out pipeline buffers plus ~one row of
    # f32 chunk temporaries (dtype-aware; bf16 inputs are upcast chunk-by-chunk only).
    bytes_per_row = F * (4 * itemsize + 4) + 4096
    rows_fit = budget // max(bytes_per_row, 1)
    min_rows = NC if NC < sub else sub

    single_step = NC <= sub          # instance axis alone cannot pipeline/shard
    use_feature_tiled = (
        _force_feature_tiled
        or rows_fit < min_rows                     # a minimum tile does not fit VMEM
        or (single_step and F >= (1 << 16))        # big volume, tiny instance count
    )

    if use_feature_tiled:
        out = _feature_tiled_forward(xr, gamma_rows, beta_rows, vmem_cap,
                                     tile_f=_force_tile_f)
    else:
        if NC <= sub:
            tile_nc = NC                           # full extent -> always legal
        else:
            cap_rows = max(sub, _round_down(int(min(256, rows_fit)), sub))
            want = max(sub, _round_down(NC // 8, sub))   # target ~8 grid steps
            tile_nc = min(cap_rows, want)
        out = _resident_forward(xr, gamma_rows, beta_rows, tile_nc, vmem_cap)

    return out.reshape(N, C, D, H, W)


# --------------------------------------------------------------------------- #
# Pure-JAX reference: InstanceNorm3d(affine=True) + ReLU
# --------------------------------------------------------------------------- #
def _reference(x, gamma, beta):
    mean = jnp.mean(x, axis=(2, 3, 4), keepdims=True)
    var = jnp.mean(jnp.square(x - mean), axis=(2, 3, 4), keepdims=True)
    y = (x - mean) * lax.rsqrt(var + EPS)
    y = y * gamma[None, :, None, None, None] + beta[None, :, None, None, None]
    return jnp.maximum(y, 0.0)


if __name__ == "__main__":
    key = jax.random.PRNGKey(0)
    kx, kg, kb, kx2, kg2, kb2 = jax.random.split(key, 6)

    # Small shapes consistent with the module; D*H*W = 512 (lane-dense).
    N, C, D, H, W = 2, 4, 4, 8, 16
    x = jax.random.normal(kx, (N, C, D, H, W), jnp.float32)
    gamma = 1.0 + 0.1 * jax.random.normal(kg, (C,), jnp.float32)
    beta = 0.1 * jax.random.normal(kb, (C,), jnp.float32)
    ref = _reference(x, gamma, beta)

    # 1) Default (row-resident) path.
    out = jax.block_until_ready(base_op_forward(x, gamma, beta))
    assert out.shape == (N, C, D, H, W)
    assert jnp.max(jnp.abs(out - ref)) < 1e-4

    # 2) Feature-tiled fallback (multi-step accumulation over the F axis).
    out_ft = jax.block_until_ready(
        base_op_forward(x, gamma, beta,
                        _force_feature_tiled=True, _force_tile_f=128))
    assert jnp.max(jnp.abs(out_ft - ref)) < 1e-4

    # 3) bf16 input on the resident path (multi-step grid over instances).
    xb = jax.random.normal(kx2, (4, 8, 4, 8, 16), jnp.float32)
    gb = 1.0 + 0.1 * jax.random.normal(kg2, (8,), jnp.float32)
    bb = 0.1 * jax.random.normal(kb2, (8,), jnp.float32)
    xb_bf16 = xb.astype(jnp.bfloat16)
    ref_b = _reference(xb_bf16.astype(jnp.float32), gb, bb)
    out_b = jax.block_until_ready(base_op_forward(xb_bf16, gb, bb))
    assert jnp.max(jnp.abs(out_b.astype(jnp.float32) - ref_b)) < 5e-2

    print("KERNEL_OK")
</pallas_src>

<mosaic_0001>
module attributes {stable_mosaic.version = 11 : i64} {
  func.func @kernel(%arg0: i32, %arg1: memref<8x1xf32, #tpu.memory_space<vmem>>, %arg2: memref<8x1xf32, #tpu.memory_space<vmem>>, %arg3: memref<8x512xf32, #tpu.memory_space<vmem>>, %arg4: memref<8x512xf32, #tpu.memory_space<vmem>>) attributes {dimension_semantics = [#tpu.dimension_semantics<parallel>], iteration_bounds = array<i64: 1>, scalar_prefetch = 0 : i64, scratch_operands = 0 : i64, tpu.core_type = #tpu.core_type<tc>, window_params = [{transform_indices = @transform_0, window_bounds = array<i64: 8, 1>}, {transform_indices = @transform_1, window_bounds = array<i64: 8, 1>}, {transform_indices = @transform_2, window_bounds = array<i64: 8, 512>}, {transform_indices = @transform_3, window_bounds = array<i64: 8, 512>}]} {
    %cst = arith.constant 0.000000e+00 : f32
    %0 = vector.broadcast %cst : f32 to vector<8x1xf32>
    %c0 = arith.constant 0 : index
    %c0_0 = arith.constant 0 : index
    %1 = vector.load %arg3[%c0, %c0_0] : memref<8x512xf32, #tpu.memory_space<vmem>>, vector<8x512xf32>
    %cst_1 = arith.constant dense<0.000000e+00> : vector<8xf32>
    %2 = vector.multi_reduction <add>, %1, %cst_1 [1] : vector<8x512xf32> to vector<8xf32>
    %3 = vector.shape_cast %2 : vector<8xf32> to vector<8x1xf32>
    %4 = arith.addf %0, %3 : vector<8x1xf32>
    %cst_2 = arith.constant 0.001953125 : f32
    %5 = vector.broadcast %cst_2 : f32 to vector<8x1xf32>
    %6 = arith.mulf %4, %5 : vector<8x1xf32>
    %cst_3 = arith.constant 0.000000e+00 : f32
    %7 = vector.broadcast %cst_3 : f32 to vector<8x1xf32>
    %c0_4 = arith.constant 0 : index
    %c0_5 = arith.constant 0 : index
    %8 = vector.load %arg3[%c0_4, %c0_5] : memref<8x512xf32, #tpu.memory_space<vmem>>, vector<8x512xf32>
    %9 = vector.broadcast %6 : vector<8x1xf32> to vector<8x512xf32>
    %10 = arith.subf %8, %9 : vector<8x512xf32>
    %11 = arith.mulf %10, %10 : vector<8x512xf32>
    %cst_6 = arith.constant dense<0.000000e+00> : vector<8xf32>
    %12 = vector.multi_reduction <add>, %11, %cst_6 [1] : vector<8x512xf32> to vector<8xf32>
    %13 = vector.shape_cast %12 : vector<8xf32> to vector<8x1xf32>
    %14 = arith.addf %7, %13 : vector<8x1xf32>
    %cst_7 = arith.constant 0.001953125 : f32
    %15 = vector.broadcast %cst_7 : f32 to vector<8x1xf32>
    %16 = arith.mulf %14, %15 : vector<8x1xf32>
    %cst_8 = arith.constant 9.99999974E-6 : f32
    %17 = vector.broadcast %cst_8 : f32 to vector<8x1xf32>
    %18 = arith.addf %16, %17 : vector<8x1xf32>
    %19 = math.rsqrt %18 : vector<8x1xf32>
    %c0_9 = arith.constant 0 : index
    %c0_10 = arith.constant 0 : index
    %20 = vector.load %arg1[%c0_9, %c0_10] : memref<8x1xf32, #tpu.memory_space<vmem>>, vector<8x1xf32>
    %21 = arith.mulf %20, %19 : vector<8x1xf32>
    %c0_11 = arith.constant 0 : index
    %c0_12 = arith.constant 0 : index
    %22 = vector.load %arg2[%c0_11, %c0_12] : memref<8x1xf32, #tpu.memory_space<vmem>>, vector<8x1xf32>
    %23 = arith.mulf %6, %21 : vector<8x1xf32>
    %24 = arith.subf %22, %23 : vector<8x1xf32>
    %c0_13 = arith.constant 0 : index
    %c0_14 = arith.constant 0 : index
    %25 = vector.load %arg3[%c0_13, %c0_14] : memref<8x512xf32, #tpu.memory_space<vmem>>, vector<8x512xf32>
    %26 = vector.broadcast %21 : vector<8x1xf32> to vector<8x512xf32>
    %27 = arith.mulf %25, %26 : vector<8x512xf32>
    %28 = vector.broadcast %24 : vector<8x1xf32> to vector<8x512xf32>
    %29 = arith.addf %27, %28 : vector<8x512xf32>
    %cst_15 = arith.constant 0.000000e+00 : f32
    %30 = vector.broadcast %cst_15 : f32 to vector<8x512xf32>
    %31 = arith.maximumf %29, %30 : vector<8x512xf32>
    %c0_16 = arith.constant 0 : index
    %c0_17 = arith.constant 0 : index
    %32 = vector.load %arg4[%c0_16, %c0_17] : memref<8x512xf32, #tpu.memory_space<vmem>>, vector<8x512xf32>
    tpu.vector_store %arg4[%c0_16, %c0_17], %31 {strides = array<i32>} : memref<8x512xf32, #tpu.memory_space<vmem>>, vector<8x512xf32>,
    return
  }
  func.func @transform_0(%arg0: i32) -> (i32, i32) {
    %c0_i32 = arith.constant 0 : i32
    %c0_i32_0 = arith.constant 0 : i32
    return %arg0, %c0_i32 : i32, i32
  }
  func.func @transform_1(%arg0: i32) -> (i32, i32) {
    %c0_i32 = arith.constant 0 : i32
    %c0_i32_0 = arith.constant 0 : i32
    return %arg0, %c0_i32 : i32, i32
  }
  func.func @transform_2(%arg0: i32) -> (i32, i32) {
    %c0_i32 = arith.constant 0 : i32
    %c0_i32_0 = arith.constant 0 : i32
    return %arg0, %c0_i32 : i32, i32
  }
  func.func @transform_3(%arg0: i32) -> (i32, i32) {
    %c0_i32 = arith.constant 0 : i32
    %c0_i32_0 = arith.constant 0 : i32
    return %arg0, %c0_i32 : i32, i32
  }
}

</mosaic_0001>

<bundles_post_ra>
// kernel: tpu_custom_call.1
= control target key start
LH: loop header
LB: loop body
LE: loop exit
PB: predicated region body
PF: predicated region fallthrough
CT: control target
= control target key end

     0   :  { %8 = vsyncpa [#allocation3], 0  ;;  %s208_s0 = inlined_call_operand.vmem [shape: f32[8,1], index: 0, kind: input, shape index: {}]   ;;  %s209_s1 = inlined_call_operand.vmem [shape: f32[8,1], index: 1, kind: input, shape index: {}]   ;;  %s210_s2 = inlined_call_operand.hbm [shape: f32[8,512], index: 2, kind: input, shape index: {}]   ;;  %s211_s3 = inlined_call_operand.hbm [shape: f32[8,512], index: 3, kind: output, shape index: {}]  }
   0x1   :  { %9 = vsyncpa [#allocation4], 0  ;;  %s19_s14 = sshll.u32 %s210_s2, 4  ;;  %s173_s15 = smov [#allocation2]   ;;  %s20_s14 = int_to_ptr.hbm [resolvable:$true] %s19_s14 }
   0x2   :  { %s21_s16 = sshll.u32 %s173_s15, 4  ;;  %s22_s16 = int_to_ptr.vmem [resolvable:$true] %s21_s16 }
   0x3   :  { %24 = dma.hbm_to_vmem [thread:$0]  %s20_s14, 512, %s22_s16, [#allocation3]  }
   0x4   :  { %169 = dma.done.wait [#allocation3], 512  }
   0x5   :  { %170 = vsyncadd [#allocation3], 4294966784  ;;  %v29_v0 = vld [vmem:[#allocation2] sm:$0xff]  ;;  %v30_v1 = vld [vmem:[#allocation2 + $0x8] sm:$0xff]  ;;  %v174_v20 = vmov 0  }
   0x6   :  { %v31_v2 = vld [vmem:[#allocation2 + $0x10] sm:$0xff]  ;;  %v33_v3 = vadd.f32 %v30_v1, %v29_v0  ;;  %v32_v4 = vld [vmem:[#allocation2 + $0x18] sm:$0xff]  ;;  %117 = vset.pattern.permute.xlu1 %v174_v20  ;;  %118 = vset.pattern.permute.xlu0 %v174_v20  ;;  %v66_v30 = vld [vmem:[%s208_s0] sm:$0xff]  ;;  %s175_s0 = smov [#allocation5]  }
   0x7   :  { %v68_v34 = vld [vmem:[%s209_s1] sm:$0xff]  ;;  %s102_s20 = sshll.u32 %s175_s0, 4  ;;  %s104_s1 = sshll.u32 %s211_s3, 4  ;;  %s103_s20 = int_to_ptr.vmem [resolvable:$true] %s102_s20  ;;  %s105_s1 = int_to_ptr.hbm [resolvable:$true] %s104_s1 }
   0x8   :  { %v34_v5 = vadd.f32 %v33_v3, %v31_v2 }
   0xa   :  { %v35_v6 = vadd.f32 %v34_v5, %v32_v4 }
   0xc   :  { %36 = vadd.xlane.f32.xlu0 %v35_v6 }
  0x7f   :  { %v37_v7 = vpop.xlane.xlu0 %36 }
  0x80   :  { %v39_v8 = vmul.f32 0.001953125, %v37_v7 }
  0x82   :  { %v40_v9 = vsub.f32 %v29_v0, %v39_v8  ;;  %v41_v10 = vsub.f32 %v30_v1, %v39_v8  ;;  %v42_v11 = vsub.f32 %v31_v2, %v39_v8  ;;  %v43_v12 = vsub.f32 %v32_v4, %v39_v8 }
  0x84   :  { %v44_v13 = vmul.f32 %v40_v9, %v40_v9  ;;  %v45_v14 = vmul.f32 %v41_v10, %v41_v10  ;;  %v46_v15 = vmul.f32 %v42_v11, %v42_v11  ;;  %v47_v17 = vmul.f32 %v43_v12, %v43_v12 }
  0x86   :  { %v48_v16 = vadd.f32 %v45_v14, %v44_v13 }
  0x88   :  { %v49_v18 = vadd.f32 %v48_v16, %v46_v15 }
  0x8a   :  { %v50_v19 = vadd.f32 %v49_v18, %v47_v17 }
  0x8c   :  { %51 = vadd.xlane.f32.xlu0 %v50_v19 }
  0xff   :  { %v52_v21 = vpop.xlane.xlu0 %51 }
 0x100   :  { %v54_v22 = vmul.f32 0.001953125, %v52_v21 }
 0x102   :  { %v55_v23 = vadd.f32 1e-05, %v54_v22 }
 0x104   :  { %119 = vrsqrt.f32 %v55_v23  ;;  %vm62_vm1 = vweird.f32 %v55_v23 }
 0x10a   :  { %v120_v24 = vpop.eup %119 }
 0x10b   :  { %v57_v25 = vmul.f32 %v120_v24, %v55_v23  ;;  %vm63_vm0 = vweird.f32 %v120_v24 }
 0x10c   :  { %vm64_vm2 = vmor %vm62_vm1, %vm63_vm0 }
 0x10d   :  { %v58_v26 = vmul.f32 %v120_v24, %v57_v25 }
 0x10f   :  { %v59_v27 = vmul.f32 0.5, %v58_v26 }
 0x111   :  { %v60_v28 = vsub.f32 1.5, %v59_v27 }
 0x113   :  { %v61_v29 = vmul.f32 %v120_v24, %v60_v28 }
 0x115   :  { %v65_v31 = vsel %vm64_vm2, %v120_v24, %v61_v29 }
 0x116   :  { %v67_v32 = vmul.f32 %v66_v30, %v65_v31 }
 0x118   :  { %73 = vperm.xlu1 %117, %v67_v32   ;;  %v69_v33 = vmul.f32 %v67_v32, %v39_v8 }
 0x11a   :  { %v70_v35 = vsub.f32 %v68_v34, %v69_v33 }
 0x120   :  { %82 = vperm.xlu1 %117, %v70_v35  }
 0x18a   :  { %v74_v36 = vpop.permute.xlu1 %73 }
 0x18b   :  { %v76_v37 = vmul.f32 %v74_v36, %v29_v0  ;;  %v77_v38 = vmul.f32 %v74_v36, %v30_v1  ;;  %v78_v39 = vmul.f32 %v74_v36, %v31_v2  ;;  %v79_v40 = vmul.f32 %v74_v36, %v32_v4 }
 0x192   :  { %v83_v41 = vpop.permute.xlu1 %82 }
 0x193   :  { %v85_v42 = vadd.f32 %v83_v41, %v76_v37  ;;  %v86_v43 = vadd.f32 %v83_v41, %v77_v38  ;;  %v87_v44 = vadd.f32 %v83_v41, %v78_v39  ;;  %v88_v45 = vadd.f32 %v83_v41, %v79_v40 }
 0x195   :  { %v89_v46 = vmax.f32 %v85_v42, 0.0  ;;  %v90_v47 = vmax.f32 %v86_v43, 0.0  ;;  %v91_v48 = vmax.f32 %v87_v44, 0.0  ;;  %v92_v49 = vmax.f32 %v88_v45, 0.0 }
 0x197   :  { %93 = vst [vmem:[#allocation5] sm:$0xff] %v89_v46 }
 0x198   :  { %94 = vst [vmem:[#allocation5 + $0x8] sm:$0xff] %v90_v47 }
 0x199   :  { %95 = vst [vmem:[#allocation5 + $0x10] sm:$0xff] %v91_v48 }
 0x19a   :  { %96 = vst [vmem:[#allocation5 + $0x18] sm:$0xff] %v92_v49 }
 0x19b   :  { %107 = dma.vmem_to_hbm [thread:$0]  %s103_s20, 512, %s105_s1, [#allocation4]  }
 0x19c   :  { %171 = dma.done.wait [#allocation4], 512  }
 0x19d   :  { %172 = vsyncadd [#allocation4], 4294966784 }
 0x19e   :  { %112 = vsyncpa [#allocation3], 1 }
 0x19f   :  { %113 = vsyncpa [#allocation4], 1 }

</bundles_post_ra>
